<compile_context>
chip_gen: v6e
topology: v6e:2x2x1
jax: 0.10.0
libtpu: 0.0.40
codegen_flags: <defaults>
</compile_context>

<pallas_src>
import functools
import math

import jax
import jax.numpy as jnp
from jax.experimental import pallas as pl
from jax.experimental.pallas import tpu as pltpu


_SMALL_K_VPU_MAX = 16   # below this K, do the matmul as VPU broadcast-MACs


def _scalar_field_kernel(x_ref, *refs, D, skip_layers, small_k_vpu):
    """Full fused ScalarField MLP for one lane-tile of points.

    Feature-major layout: activations are (features, tm) so the tm points sit
    on lanes -> contiguous input DMA and unmasked lane-dense output stores.
    """
    o_ref = refs[-1]
    pos = 0
    w0_ref = refs[pos]; pos += 1                  # (W, C)  f32
    wh_ref = None
    if D > 1:
        wh_ref = refs[pos]; pos += 1              # (D-1, W, W) bf16
    wx_ref = None
    if skip_layers:
        wx_ref = refs[pos]; pos += 1              # (n_skip, W, C) f32
    b_ref = refs[pos]; pos += 1                   # (D, W, 1) f32
    wo_ref = refs[pos]; pos += 1                  # (8, W) bf16 (row 0 valid)
    bo_ref = refs[pos]; pos += 1                  # (1, 1) f32

    x = x_ref[...].astype(jnp.float32)            # (C, tm)

    def small_k(w, xin):
        # (W, K) @ (K, tm) with tiny K: f32 VPU broadcast-MACs (avoids a
        # padded-K MXU pass).  Falls back to a bf16 MXU matmul for larger K.
        if small_k_vpu:
            acc = w[:, 0:1] * xin[0:1, :]
            for k in range(1, w.shape[1]):
                acc = acc + w[:, k:k + 1] * xin[k:k + 1, :]
            return acc
        return jnp.dot(w.astype(jnp.bfloat16), xin.astype(jnp.bfloat16),
                       preferred_element_type=jnp.float32)

    # Layer 0 (K = input_ch).
    h = jnp.maximum(small_k(w0_ref[...], x) + b_ref[0], 0.0)

    # Hidden layers 1..D-1: bf16 operands on the MXU, f32 accumulate/bias/ReLU.
    slot = 0
    for j in range(1, D):
        acc = jnp.dot(wh_ref[j - 1], h.astype(jnp.bfloat16),
                      preferred_element_type=jnp.float32)
        if (j - 1) in skip_layers:                # torch.cat([x, h]) -> split weight
            acc = acc + small_k(wx_ref[slot], x)
            slot += 1
        h = jnp.maximum(acc + b_ref[j], 0.0)

    # Output head: rows 1..7 of wo are zero padding (tile-aligned M).
    head = jnp.dot(wo_ref[...], h.astype(jnp.bfloat16),
                   preferred_element_type=jnp.float32)           # (8, tm)
    o_ref[...] = (head[0:1, :] + bo_ref[...]).astype(o_ref.dtype)


class ScalarField:
    """JAX/Pallas equivalent of the PyTorch ScalarField module."""

    def __init__(self, input_ch=3, W=128, D=4, skips=(), init_val=-2.0,
                 key=None, row_tile=2048):
        assert D >= 1
        self.input_ch = input_ch
        self.W = W
        self.D = D
        self.skips = tuple(sorted(set(int(s) for s in skips)))
        # Skip i concatenates x after layer i and feeds layer i+1 (must exist).
        # TODO(synk): a skip on the last hidden layer would change the head's
        # input width; the torch module itself errors there, so unsupported.
        self.skip_layers = tuple(s for s in self.skips if 0 <= s < D - 1)
        self.row_tile = int(row_tile)

        if key is None:
            key = jax.random.PRNGKey(0)

        def kaiming_uniform(k, out_dim, in_dim):
            # kaiming_uniform_(a=0, fan_in, relu): bound = sqrt(6 / fan_in).
            bound = math.sqrt(6.0 / in_dim)
            return jax.random.uniform(k, (out_dim, in_dim), jnp.float32,
                                      -bound, bound)

        key, sub = jax.random.split(key)
        self.w0 = kaiming_uniform(sub, W, input_ch)        # torch [out, in]
        biases = [jnp.zeros((W, 1), jnp.float32)]
        wh_list, wx_list = [], []
        for j in range(1, D):
            fan_in = W + input_ch if (j - 1) in self.skip_layers else W
            key, sub = jax.random.split(key)
            w_full = kaiming_uniform(sub, W, fan_in)
            if (j - 1) in self.skip_layers:
                wx_list.append(w_full[:, :input_ch])        # cat([x, h]): x first
                wh_list.append(w_full[:, input_ch:])
            else:
                wh_list.append(w_full)
            biases.append(jnp.zeros((W, 1), jnp.float32))
        self.wh = jnp.stack(wh_list) if wh_list else None   # (D-1, W, W) f32
        self.wx = jnp.stack(wx_list) if wx_list else None   # (n_skip, W, C) f32
        self.b = jnp.stack(biases)                          # (D, W, 1) f32
        self.w_out = jnp.zeros((1, W), jnp.float32)         # torch init: zeros
        self.b_out = jnp.full((1, 1), float(init_val), jnp.float32)

    def __call__(self, x):
        assert x.shape[-1] == self.input_ch
        lead = x.shape[:-1]
        n_rows = int(math.prod(lead)) if lead else 1
        # Feature-major: points on lanes -> contiguous DMAs, lane-dense output.
        xt = jnp.transpose(x.reshape(n_rows, self.input_ch).astype(jnp.float32))

        def rup(a, m):
            return ((a + m - 1) // m) * m

        # Lane tile: multiple of 128, >= 2 grid steps whenever >128 points
        # (v7x megacore), padding waste capped at ~128 rows per tile.
        n128 = rup(n_rows, 128)
        n_tiles = max(pl.cdiv(n128, self.row_tile), 2 if n128 >= 256 else 1)
        tm = rup(pl.cdiv(n_rows, n_tiles), 128)
        n_tiles = pl.cdiv(n_rows, tm)
        n_padded = n_tiles * tm
        if n_padded != n_rows:
            xt = jnp.pad(xt, ((0, 0), (0, n_padded - n_rows)))

        # bf16 matmul operands (f32 MXU accumulation); biases / small-K weights
        # stay f32 (VPU path).  Head weight padded to 8 sublanes.
        wo_pad = jnp.pad(self.w_out.astype(jnp.bfloat16), ((0, 7), (0, 0)))

        params = [self.w0]
        in_specs = [pl.BlockSpec((self.input_ch, tm), lambda i: (0, i)),
                    pl.BlockSpec(self.w0.shape, lambda i: (0, 0))]
        if self.D > 1:
            wh = self.wh.astype(jnp.bfloat16)
            params.append(wh)
            in_specs.append(pl.BlockSpec(wh.shape, lambda i: (0, 0, 0)))
        if self.skip_layers:
            params.append(self.wx)
            in_specs.append(pl.BlockSpec(self.wx.shape, lambda i: (0, 0, 0)))
        params.extend([self.b, wo_pad, self.b_out])
        in_specs.extend([pl.BlockSpec(self.b.shape, lambda i: (0, 0, 0)),
                         pl.BlockSpec(wo_pad.shape, lambda i: (0, 0)),
                         pl.BlockSpec(self.b_out.shape, lambda i: (0, 0))])

        kernel = functools.partial(
            _scalar_field_kernel, D=self.D, skip_layers=self.skip_layers,
            small_k_vpu=(self.input_ch <= _SMALL_K_VPU_MAX))

        out = pl.pallas_call(
            kernel,
            out_shape=jax.ShapeDtypeStruct((1, n_padded), jnp.float32),
            grid_spec=pltpu.PrefetchScalarGridSpec(
                num_scalar_prefetch=0,
                grid=(n_tiles,),
                in_specs=in_specs,
                out_specs=pl.BlockSpec((1, tm), lambda i: (0, i)),
            ),
            compiler_params=pltpu.CompilerParams(
                dimension_semantics=("parallel",)),
        )(xt, *params)

        return out[0, :n_rows].reshape(lead)      # .squeeze(-1) semantics


def _reference(x, field: ScalarField, bf16_matmul=True):
    """Pure-JAX reference.  bf16_matmul=True mirrors the kernel's dtype policy
    (bf16 MXU operands, f32 accumulation); False is the plain f32 module."""
    lead = x.shape[:-1]
    xf = x.reshape(-1, field.input_ch).astype(jnp.float32)

    def mm(a, w):                                  # a: (N, K); w: (out, K)
        if bf16_matmul:
            return jnp.dot(a.astype(jnp.bfloat16), w.astype(jnp.bfloat16).T,
                           preferred_element_type=jnp.float32)
        return jnp.dot(a, w.T, precision=jax.lax.Precision.HIGHEST)

    def mm_small(a, w):                            # mirrors the kernel's f32 VPU path
        if field.input_ch <= _SMALL_K_VPU_MAX:
            return jnp.dot(a, w.T, precision=jax.lax.Precision.HIGHEST)
        return mm(a, w)

    h = jnp.maximum(mm_small(xf, field.w0) + field.b[0][:, 0], 0.0)
    si = 0
    for j in range(1, field.D):
        acc = mm(h, field.wh[j - 1])
        if (j - 1) in field.skip_layers:
            acc = acc + mm_small(xf, field.wx[si])
            si += 1
        h = jnp.maximum(acc + field.b[j][:, 0], 0.0)
    out = mm(h, field.w_out) + field.b_out[0, 0]
    return out[:, 0].reshape(lead)


if __name__ == "__main__":
    key = jax.random.PRNGKey(0)
    k_param, k_x, k_head, k_param2, k_head2 = jax.random.split(key, 5)

    # Default config: input_ch=3, W=128, D=4, skips=(), init_val=-2.0.
    field = ScalarField(input_ch=3, W=128, D=4, skips=(), init_val=-2.0,
                        key=k_param)
    x = jax.random.normal(k_x, (2, 16, 3), dtype=jnp.float32)

    out = jax.block_until_ready(field(x))
    assert out.shape == (2, 16), out.shape
    ref = _reference(x, field)
    assert jnp.allclose(out, ref, atol=1e-3, rtol=1e-3), \
        float(jnp.max(jnp.abs(out - ref)))

    # Faithful init has a zero head (output == -2 everywhere); run with a
    # non-trivial head so the full fused MLP path is actually exercised.
    field.w_out = 0.05 * jax.random.normal(k_head, (1, field.W),
                                           dtype=jnp.float32)
    out2 = jax.block_until_ready(field(x))
    ref2 = _reference(x, field)                         # bf16-matched
    ref2_f32 = _reference(x, field, bf16_matmul=False)  # plain f32 module
    assert jnp.allclose(out2, ref2, atol=1e-3, rtol=1e-3), \
        float(jnp.max(jnp.abs(out2 - ref2)))
    assert jnp.allclose(out2, ref2_f32, atol=5e-2, rtol=5e-2), \
        float(jnp.max(jnp.abs(out2 - ref2_f32)))

    # Skip-connection config (split-weight form inside the kernel).
    field_s = ScalarField(input_ch=3, W=128, D=4, skips=(1,), init_val=-2.0,
                          key=k_param2)
    field_s.w_out = 0.05 * jax.random.normal(k_head2, (1, field_s.W),
                                             dtype=jnp.float32)
    out3 = jax.block_until_ready(field_s(x))
    assert out3.shape == (2, 16), out3.shape
    ref3 = _reference(x, field_s)
    assert jnp.allclose(out3, ref3, atol=1e-3, rtol=1e-3), \
        float(jnp.max(jnp.abs(out3 - ref3)))

    print("KERNEL_OK")
</pallas_src>

<mosaic_0001>
module attributes {stable_mosaic.version = 11 : i64} {
  func.func @_scalar_field_kernel(%arg0: i32, %arg1: memref<3x128xf32, #tpu.memory_space<vmem>>, %arg2: memref<128x3xf32, #tpu.memory_space<vmem>>, %arg3: memref<3x128x128xbf16, #tpu.memory_space<vmem>>, %arg4: memref<4x128x1xf32, #tpu.memory_space<vmem>>, %arg5: memref<8x128xbf16, #tpu.memory_space<vmem>>, %arg6: memref<1x1xf32, #tpu.memory_space<vmem>>, %arg7: memref<1x128xf32, #tpu.memory_space<vmem>>) attributes {dimension_semantics = [#tpu.dimension_semantics<parallel>], iteration_bounds = array<i64: 1>, scalar_prefetch = 0 : i64, scratch_operands = 0 : i64, tpu.core_type = #tpu.core_type<tc>, window_params = [{transform_indices = @transform_0, window_bounds = array<i64: 3, 128>}, {pipeline_mode = #tpu.pipeline_mode<synchronous>, transform_indices = @transform_1, window_bounds = array<i64: 128, 3>}, {pipeline_mode = #tpu.pipeline_mode<synchronous>, transform_indices = @transform_2, window_bounds = array<i64: 3, 128, 128>}, {pipeline_mode = #tpu.pipeline_mode<synchronous>, transform_indices = @transform_3, window_bounds = array<i64: 4, 128, 1>}, {pipeline_mode = #tpu.pipeline_mode<synchronous>, transform_indices = @transform_4, window_bounds = array<i64: 8, 128>}, {pipeline_mode = #tpu.pipeline_mode<synchronous>, transform_indices = @transform_5, window_bounds = array<i64: 1, 1>}, {transform_indices = @transform_6, window_bounds = array<i64: 1, 128>}]} {
    %c0 = arith.constant 0 : index
    %c0_0 = arith.constant 0 : index
    %0 = vector.load %arg1[%c0, %c0_0] : memref<3x128xf32, #tpu.memory_space<vmem>>, vector<3x128xf32>
    %c0_1 = arith.constant 0 : index
    %c0_2 = arith.constant 0 : index
    %1 = vector.load %arg2[%c0_1, %c0_2] : memref<128x3xf32, #tpu.memory_space<vmem>>, vector<128x3xf32>
    %2 = vector.extract_strided_slice %1 {offsets = [0, 0], sizes = [128, 1], strides = [1, 1]} : vector<128x3xf32> to vector<128x1xf32>
    %3 = vector.extract_strided_slice %0 {offsets = [0, 0], sizes = [1, 128], strides = [1, 1]} : vector<3x128xf32> to vector<1x128xf32>
    %4 = vector.broadcast %2 : vector<128x1xf32> to vector<128x128xf32>
    %5 = vector.broadcast %3 : vector<1x128xf32> to vector<128x128xf32>
    %6 = arith.mulf %4, %5 : vector<128x128xf32>
    %7 = vector.extract_strided_slice %1 {offsets = [0, 1], sizes = [128, 1], strides = [1, 1]} : vector<128x3xf32> to vector<128x1xf32>
    %8 = vector.extract_strided_slice %0 {offsets = [1, 0], sizes = [1, 128], strides = [1, 1]} : vector<3x128xf32> to vector<1x128xf32>
    %9 = vector.broadcast %7 : vector<128x1xf32> to vector<128x128xf32>
    %10 = vector.broadcast %8 : vector<1x128xf32> to vector<128x128xf32>
    %11 = arith.mulf %9, %10 : vector<128x128xf32>
    %12 = arith.addf %6, %11 : vector<128x128xf32>
    %13 = vector.extract_strided_slice %1 {offsets = [0, 2], sizes = [128, 1], strides = [1, 1]} : vector<128x3xf32> to vector<128x1xf32>
    %14 = vector.extract_strided_slice %0 {offsets = [2, 0], sizes = [1, 128], strides = [1, 1]} : vector<3x128xf32> to vector<1x128xf32>
    %15 = vector.broadcast %13 : vector<128x1xf32> to vector<128x128xf32>
    %16 = vector.broadcast %14 : vector<1x128xf32> to vector<128x128xf32>
    %17 = arith.mulf %15, %16 : vector<128x128xf32>
    %18 = arith.addf %12, %17 : vector<128x128xf32>
    %c0_3 = arith.constant 0 : index
    %c0_4 = arith.constant 0 : index
    %c0_5 = arith.constant 0 : index
    %19 = vector.load %arg4[%c0_3, %c0_4, %c0_5] : memref<4x128x1xf32, #tpu.memory_space<vmem>>, vector<1x128x1xf32>
    %20 = vector.shape_cast %19 : vector<1x128x1xf32> to vector<128x1xf32>
    %21 = vector.broadcast %20 : vector<128x1xf32> to vector<128x128xf32>
    %22 = arith.addf %18, %21 : vector<128x128xf32>
    %cst = arith.constant 0.000000e+00 : f32
    %23 = vector.broadcast %cst : f32 to vector<128x128xf32>
    %24 = arith.maximumf %22, %23 : vector<128x128xf32>
    %c0_6 = arith.constant 0 : index
    %c0_7 = arith.constant 0 : index
    %c0_8 = arith.constant 0 : index
    %25 = vector.load %arg3[%c0_6, %c0_7, %c0_8] : memref<3x128x128xbf16, #tpu.memory_space<vmem>>, vector<1x128x128xbf16>
    %26 = vector.shape_cast %25 : vector<1x128x128xbf16> to vector<128x128xbf16>
    %27 = arith.truncf %24 : vector<128x128xf32> to vector<128x128xbf16>
    %cst_9 = arith.constant dense<0.000000e+00> : vector<128x128xf32>
    %28 = tpu.matmul %26, %27, %cst_9 {dimension_numbers = #tpu.dot_dimension_numbers<[1], [0], [0], [1], [0, 0, 1, 1], [], []>} : vector<128x128xbf16>, vector<128x128xbf16>, vector<128x128xf32> -> vector<128x128xf32>
    %c1 = arith.constant 1 : index
    %c0_10 = arith.constant 0 : index
    %c0_11 = arith.constant 0 : index
    %29 = vector.load %arg4[%c1, %c0_10, %c0_11] : memref<4x128x1xf32, #tpu.memory_space<vmem>>, vector<1x128x1xf32>
    %30 = vector.shape_cast %29 : vector<1x128x1xf32> to vector<128x1xf32>
    %31 = vector.broadcast %30 : vector<128x1xf32> to vector<128x128xf32>
    %32 = arith.addf %28, %31 : vector<128x128xf32>
    %cst_12 = arith.constant 0.000000e+00 : f32
    %33 = vector.broadcast %cst_12 : f32 to vector<128x128xf32>
    %34 = arith.maximumf %32, %33 : vector<128x128xf32>
    %c1_13 = arith.constant 1 : index
    %c0_14 = arith.constant 0 : index
    %c0_15 = arith.constant 0 : index
    %35 = vector.load %arg3[%c1_13, %c0_14, %c0_15] : memref<3x128x128xbf16, #tpu.memory_space<vmem>>, vector<1x128x128xbf16>
    %36 = vector.shape_cast %35 : vector<1x128x128xbf16> to vector<128x128xbf16>
    %37 = arith.truncf %34 : vector<128x128xf32> to vector<128x128xbf16>
    %cst_16 = arith.constant dense<0.000000e+00> : vector<128x128xf32>
    %38 = tpu.matmul %36, %37, %cst_16 {dimension_numbers = #tpu.dot_dimension_numbers<[1], [0], [0], [1], [0, 0, 1, 1], [], []>} : vector<128x128xbf16>, vector<128x128xbf16>, vector<128x128xf32> -> vector<128x128xf32>
    %c2 = arith.constant 2 : index
    %c0_17 = arith.constant 0 : index
    %c0_18 = arith.constant 0 : index
    %39 = vector.load %arg4[%c2, %c0_17, %c0_18] : memref<4x128x1xf32, #tpu.memory_space<vmem>>, vector<1x128x1xf32>
    %40 = vector.shape_cast %39 : vector<1x128x1xf32> to vector<128x1xf32>
    %41 = vector.broadcast %40 : vector<128x1xf32> to vector<128x128xf32>
    %42 = arith.addf %38, %41 : vector<128x128xf32>
    %cst_19 = arith.constant 0.000000e+00 : f32
    %43 = vector.broadcast %cst_19 : f32 to vector<128x128xf32>
    %44 = arith.maximumf %42, %43 : vector<128x128xf32>
    %c2_20 = arith.constant 2 : index
    %c0_21 = arith.constant 0 : index
    %c0_22 = arith.constant 0 : index
    %45 = vector.load %arg3[%c2_20, %c0_21, %c0_22] : memref<3x128x128xbf16, #tpu.memory_space<vmem>>, vector<1x128x128xbf16>
    %46 = vector.shape_cast %45 : vector<1x128x128xbf16> to vector<128x128xbf16>
    %47 = arith.truncf %44 : vector<128x128xf32> to vector<128x128xbf16>
    %cst_23 = arith.constant dense<0.000000e+00> : vector<128x128xf32>
    %48 = tpu.matmul %46, %47, %cst_23 {dimension_numbers = #tpu.dot_dimension_numbers<[1], [0], [0], [1], [0, 0, 1, 1], [], []>} : vector<128x128xbf16>, vector<128x128xbf16>, vector<128x128xf32> -> vector<128x128xf32>
    %c3 = arith.constant 3 : index
    %c0_24 = arith.constant 0 : index
    %c0_25 = arith.constant 0 : index
    %49 = vector.load %arg4[%c3, %c0_24, %c0_25] : memref<4x128x1xf32, #tpu.memory_space<vmem>>, vector<1x128x1xf32>
    %50 = vector.shape_cast %49 : vector<1x128x1xf32> to vector<128x1xf32>
    %51 = vector.broadcast %50 : vector<128x1xf32> to vector<128x128xf32>
    %52 = arith.addf %48, %51 : vector<128x128xf32>
    %cst_26 = arith.constant 0.000000e+00 : f32
    %53 = vector.broadcast %cst_26 : f32 to vector<128x128xf32>
    %54 = arith.maximumf %52, %53 : vector<128x128xf32>
    %c0_27 = arith.constant 0 : index
    %c0_28 = arith.constant 0 : index
    %55 = vector.load %arg5[%c0_27, %c0_28] : memref<8x128xbf16, #tpu.memory_space<vmem>>, vector<8x128xbf16>
    %56 = arith.truncf %54 : vector<128x128xf32> to vector<128x128xbf16>
    %cst_29 = arith.constant dense<0.000000e+00> : vector<8x128xf32>
    %57 = tpu.matmul %55, %56, %cst_29 {dimension_numbers = #tpu.dot_dimension_numbers<[1], [0], [0], [1], [0, 0, 1, 1], [], []>} : vector<8x128xbf16>, vector<128x128xbf16>, vector<8x128xf32> -> vector<8x128xf32>
    %58 = vector.extract_strided_slice %57 {offsets = [0, 0], sizes = [1, 128], strides = [1, 1]} : vector<8x128xf32> to vector<1x128xf32>
    %c0_30 = arith.constant 0 : index
    %c0_31 = arith.constant 0 : index
    %59 = vector.load %arg6[%c0_30, %c0_31] : memref<1x1xf32, #tpu.memory_space<vmem>>, vector<1x1xf32>
    %60 = vector.broadcast %59 : vector<1x1xf32> to vector<1x128xf32>
    %61 = arith.addf %58, %60 : vector<1x128xf32>
    %c0_32 = arith.constant 0 : index
    %c0_33 = arith.constant 0 : index
    %62 = vector.load %arg7[%c0_32, %c0_33] : memref<1x128xf32, #tpu.memory_space<vmem>>, vector<1x128xf32>
    tpu.vector_store %arg7[%c0_32, %c0_33], %61 {strides = array<i32>} : memref<1x128xf32, #tpu.memory_space<vmem>>, vector<1x128xf32>,
    return
  }
  func.func @transform_0(%arg0: i32) -> (i32, i32) {
    %c0_i32 = arith.constant 0 : i32
    %c0_i32_0 = arith.constant 0 : i32
    return %c0_i32, %arg0 : i32, i32
  }
  func.func @transform_1(%arg0: i32) -> (i32, i32) {
    %c0_i32 = arith.constant 0 : i32
    %c0_i32_0 = arith.constant 0 : i32
    %c0_i32_1 = arith.constant 0 : i32
    return %c0_i32, %c0_i32_0 : i32, i32
  }
  func.func @transform_2(%arg0: i32) -> (i32, i32, i32) {
    %c0_i32 = arith.constant 0 : i32
    %c0_i32_0 = arith.constant 0 : i32
    %c0_i32_1 = arith.constant 0 : i32
    %c0_i32_2 = arith.constant 0 : i32
    return %c0_i32, %c0_i32_0, %c0_i32_1 : i32, i32, i32
  }
  func.func @transform_3(%arg0: i32) -> (i32, i32, i32) {
    %c0_i32 = arith.constant 0 : i32
    %c0_i32_0 = arith.constant 0 : i32
    %c0_i32_1 = arith.constant 0 : i32
    %c0_i32_2 = arith.constant 0 : i32
    return %c0_i32, %c0_i32_0, %c0_i32_1 : i32, i32, i32
  }
  func.func @transform_4(%arg0: i32) -> (i32, i32) {
    %c0_i32 = arith.constant 0 : i32
    %c0_i32_0 = arith.constant 0 : i32
    %c0_i32_1 = arith.constant 0 : i32
    return %c0_i32, %c0_i32_0 : i32, i32
  }
  func.func @transform_5(%arg0: i32) -> (i32, i32) {
    %c0_i32 = arith.constant 0 : i32
    %c0_i32_0 = arith.constant 0 : i32
    %c0_i32_1 = arith.constant 0 : i32
    return %c0_i32, %c0_i32_0 : i32, i32
  }
  func.func @transform_6(%arg0: i32) -> (i32, i32) {
    %c0_i32 = arith.constant 0 : i32
    %c0_i32_0 = arith.constant 0 : i32
    return %c0_i32, %arg0 : i32, i32
  }
}

</mosaic_0001>

<bundles_post_ra>
// kernel: tpu_custom_call.1
= control target key start
LH: loop header
LB: loop body
LE: loop exit
PB: predicated region body
PF: predicated region fallthrough
CT: control target
= control target key end

     0   :  { %s2316_s0 = inlined_call_operand.vmem [shape: f32[3,128], index: 0, kind: input, shape index: {}]   ;;  %s2317_s1 = inlined_call_operand.vmem [shape: f32[128,3], index: 1, kind: input, shape index: {}]   ;;  %s2318_s2 = inlined_call_operand.vmem [shape: bf16[3,128,128], index: 2, kind: input, shape index: {}]   ;;  %s2319_s3 = inlined_call_operand.vmem [shape: f32[4,128,1], index: 3, kind: input, shape index: {}]   ;;  %s2320_s4 = inlined_call_operand.vmem [shape: bf16[8,128], index: 4, kind: input, shape index: {}]   ;;  %s2321_s5 = inlined_call_operand.<no memory space> [shape: f32[1,1], index: 5, kind: input, shape index: {}]   ;;  %s2322_s6 = inlined_call_operand.hbm [shape: f32[1,128], index: 6, kind: output, shape index: {}]  }
   0x1   :  { %v11_v0 = vstv %s2321_s5 }
   0x2   :  { %12 = vst [vmem:[#allocation2] sm:$0x1] %v11_v0 }
   0x3   :  { %v42_v1 = vld [vmem:[%s2317_s1 + $0x70] sm:$0xff]  ;;  %v1751_v2 = vmov 2   ;;  %v1752_v3 = vmov 1   ;;  %v43_v4 = vld [vmem:[%s2317_s1 + $0x78] sm:$0xff]  ;;  %v40_v5 = vld [vmem:[%s2317_s1 + $0x60] sm:$0xff]  ;;  %v1753_v8 = vmov 0  }
   0x4   :  { %1679 = vset.pattern.permute.xlu0 %v1751_v2  ;;  %1678 = vset.pattern.permute.xlu1 %v1752_v3  ;;  %v39_v6 = vld [vmem:[%s2317_s1 + $0x58] sm:$0xff]  ;;  %v38_v7 = vld [vmem:[%s2317_s1 + $0x50] sm:$0xff]  ;;  %v37_v9 = vld [vmem:[%s2317_s1 + $0x48] sm:$0xff] }
   0x5   :  { %301 = vperm.xlu0 %1679, %v42_v1   ;;  %201 = vperm.xlu1 %1678, %v42_v1   ;;  %v1821_v10 = vld [vmem:[%s2317_s1 + $0x38] sm:$0xff]  ;;  %v41_v11 = vld [vmem:[%s2317_s1 + $0x68] sm:$0xff] }
   0x6   :  { %v1831_v12 = vld [vmem:[%s2317_s1 + $0x28] sm:$0xff]  ;;  %v1837_v13 = vld [vmem:[%s2317_s1 + $0x18] sm:$0xff] }
   0x9   :  { %205 = vperm.xlu1 %1678, %v43_v4   ;;  %293 = vperm.xlu0 %1679, %v40_v5  }
   0xd   :  { %1680 = vset.pattern.permute.xlu1 %v1751_v2  ;;  %289 = vperm.xlu0 %1679, %v39_v6  }
   0xe   :  { %305 = vperm.xlu1 %1680, %v43_v4  }
  0x11   :  { %1687 = vset.pattern.permute.xlu0 %v1752_v3 }
  0x12   :  { %1681 = vset.pattern.permute.xlu1 %v1753_v8  ;;  %185 = vperm.xlu0 %1687, %v38_v7  }
  0x13   :  { %106 = vperm.xlu1 %1681, %v40_v5  }
  0x16   :  { %181 = vperm.xlu0 %1687, %v37_v9  }
  0x17   :  { %1682 = vset.pattern.permute.xlu1 %v1752_v3 }
  0x18   :  { %193 = vperm.xlu1 %1682, %v40_v5  }
  0x1a   :  { %173 = vperm.xlu0 %1687, %v1821_v10  }
  0x1c   :  { %197 = vperm.xlu1 %1682, %v41_v11  }
  0x1e   :  { %165 = vperm.xlu0 %1687, %v1831_v12  }
  0x20   :  { %1683 = vset.pattern.permute.xlu1 %v1751_v2 }
  0x21   :  { %297 = vperm.xlu1 %1683, %v41_v11  }
  0x22   :  { %157 = vperm.xlu0 %1687, %v1837_v13  }
  0x23   :  { %13 = vsyncpa [#allocation4], 0  ;;  %v358_v14 = vld [vmem:[%s2319_s3 + $0x70] sm:$0xff]  ;;  %v1847_v15 = vld [vmem:[%s2317_s1 + $0x8] sm:$0xff]  ;;  %v124_v56 = vlaneseq  ;;  %vm1755_vm0 = vmmov 0   ;;  %s1756_s22 = smov [#allocation3]  }
  0x24   :  { %v359_v16 = vld [vmem:[%s2319_s3 + $0x78] sm:$0xff]  ;;  %v36_v17 = vld [vmem:[%s2317_s1 + $0x40] sm:$0xff]  ;;  %v354_v19 = vld [vmem:[%s2319_s3 + $0x50] sm:$0xff]  ;;  %s1387_s23 = sshll.u32 %s1756_s22, 4  ;;  %s1388_s23 = int_to_ptr.vmem [resolvable:$true] %s1387_s23 }
  0x25   :  { %1684 = vset.pattern.permute.xlu1 %v1753_v8  ;;  %v356_v18 = vld [vmem:[%s2319_s3 + $0x60] sm:$0xff]  ;;  %v357_v20 = vld [vmem:[%s2319_s3 + $0x68] sm:$0xff]  ;;  %v350_v22 = vld [vmem:[%s2319_s3 + $0x30] sm:$0xff]  ;;  %v1990_v61 = vshrl.u32 %v124_v56, 7  ;;  %s1729_s24 = scalar_lea.vmem %s1388_s23, 16  ;;  %s1733_s25 = scalar_lea.vmem %s1388_s23, 32 }
  0x26   :  { %432 = vperm.xlu1 %1684, %v358_v14   ;;  %149 = vperm.xlu0 %1687, %v1847_v15   ;;  %v352_v21 = vld [vmem:[%s2319_s3 + $0x40] sm:$0xff]  ;;  %v355_v24 = vld [vmem:[%s2319_s3 + $0x58] sm:$0xff]  ;;  %v34_v25 = vld [vmem:[%s2317_s1 + $0x30] sm:$0xff]  ;;  %p1730_p0 = scmp.ne.s32.totalorder %s1388_s23, %s1729_s24  ;;  %p1734_p1 = scmp.lt.s32.totalorder %s1388_s23, %s1388_s23 }
  0x27   :  { %v348_v23 = vld [vmem:[%s2319_s3 + $0x20] sm:$0xff]  ;;  %v346_v26 = vld [vmem:[%s2319_s3 + $0x10] sm:$0xff]  ;;  %v345_v27 = vld [vmem:[%s2319_s3 + $0x8] sm:$0xff]  ;;  %p1735_p2 = scmp.lt.s32.totalorder %s1733_s25, %s1729_s24 }
  0x28   :  { %v1410_v28 = vld [vmem:[%s2319_s3 + $0xf8] sm:$0xff]  ;;  %v1408_v29 = vld [vmem:[%s2319_s3 + $0xe8] sm:$0xff]  ;;  %v32_v32 = vld [vmem:[%s2317_s1 + $0x20] sm:$0xff] }
  0x29   :  { %v353_v30 = vld [vmem:[%s2319_s3 + $0x48] sm:$0xff]  ;;  %v1406_v31 = vld [vmem:[%s2319_s3 + $0xd8] sm:$0xff]  ;;  %v30_v44 = vld [vmem:[%s2317_s1 + $0x10] sm:$0xff]  ;;  %p1736_p3 = por %p1735_p2, %p1734_p1 }
  0x2a   :  { %96 = vperm.xlu1 %1684, %v38_v7   ;;  %1702 = vset.pattern.permute.xlu0 %v1753_v8  ;;  %v1404_v33 = vld [vmem:[%s2319_s3 + $0xc8] sm:$0xff]  ;;  %v1402_v34 = vld [vmem:[%s2319_s3 + $0xb8] sm:$0xff]  ;;  %v27_v5 = vld [vmem:[%s2316_s0] sm:$0x7] }
  0x2b   :  { %116 = vperm.xlu0 %1702, %v42_v1   ;;  %v1400_v35 = vld [vmem:[%s2319_s3 + $0xa8] sm:$0xff]  ;;  %v1398_v36 = vld [vmem:[%s2319_s3 + $0x98] sm:$0xff]  ;;  %v28_v1 = vld [vmem:[%s2317_s1] sm:$0xff]  ;;  %p1737_p4 = pnand %p1736_p3, %p1730_p0 }
  0x2c   :  { %v1396_v39 = vld [vmem:[%s2319_s3 + $0x88] sm:$0xff]  ;;  %v351_v40 = vld [vmem:[%s2319_s3 + $0x38] sm:$0xff] }
  0x2d   :  { %v1450_v43 = vld [vmem:[%s2319_s3 + $0x178] sm:$0xff]  ;;  %v1448_v46 = vld [vmem:[%s2319_s3 + $0x168] sm:$0xff] }
  0x2e   :  { %101 = vperm.xlu1 %1684, %v39_v6   ;;  %v1446_v48 = vld [vmem:[%s2319_s3 + $0x158] sm:$0xff]  ;;  %v1444_v51 = vld [vmem:[%s2319_s3 + $0x148] sm:$0xff] }
  0x2f   :  { %121 = vperm.xlu0 %1702, %v43_v4   ;;  %v1442_v54 = vld [vmem:[%s2319_s3 + $0x138] sm:$0xff]  ;;  %v1440_v58 = vld [vmem:[%s2319_s3 + $0x128] sm:$0xff]  ;;  %v210_v4 = vsub.s32 1, %v1990_v61 }
  0x30   :  { %v349_v60 = vld [vmem:[%s2319_s3 + $0x28] sm:$0xff]  ;;  %v1438_v63 = vld [vmem:[%s2319_s3 + $0x118] sm:$0xff] }
  0x32   :  { %1685 = vset.pattern.permute.xlu1 %v1752_v3 }
  0x33   :  { %189 = vperm.xlu1 %1685, %v39_v6   ;;  %111 = vperm.xlu0 %1702, %v41_v11   ;;  %v1436_v6 = vld [vmem:[%s2319_s3 + $0x108] sm:$0xff]  ;;  %v2013_v11 = vrot.slane %v27_v5, %v210_v4 }
  0x37   :  { %1686 = vset.pattern.permute.xlu1 %v1751_v2  ;;  %437 = vperm.xlu0 %1702, %v359_v16  }
  0x38   :  { %285 = vperm.xlu1 %1686, %v38_v7   ;;  %v126_v7 = vsub.s32 0, %v1990_v61 }
  0x3a   :  { %v2021_v14 = vrot.slane %v27_v5, %v126_v7 }
  0x3b   :  { %86 = vperm.xlu0 %1702, %v36_v17  }
  0x3c   :  { %1688 = vset.pattern.permute.xlu1 %v1753_v8 }
  0x3d   :  { %422 = vperm.xlu1 %1688, %v356_v18  }
  0x3f   :  { %412 = vperm.xlu0 %1702, %v354_v19  }
  0x41   :  { %427 = vperm.xlu1 %1688, %v357_v20  }
  0x43   :  { %81 = vperm.xlu0 %1702, %v1821_v10  }
  0x45   :  { %91 = vperm.xlu1 %1688, %v37_v9  }
  0x47   :  { %402 = vperm.xlu0 %1702, %v352_v21   ;;  %v1488_v21 = vld [vmem:[%s2319_s3 + $0x1e8] sm:$0xff] }
  0x49   :  { %1689 = vset.pattern.permute.xlu1 %v1752_v3 }
  0x4a   :  { %177 = vperm.xlu1 %1689, %v36_v17  }
  0x4b   :  { %71 = vperm.xlu0 %1702, %v1831_v12  }
  0x4e   :  { %1690 = vset.pattern.permute.xlu1 %v1751_v2 }
  0x4f   :  { %277 = vperm.xlu1 %1690, %v36_v17   ;;  %392 = vperm.xlu0 %1702, %v350_v22  }
  0x53   :  { %281 = vperm.xlu1 %1690, %v37_v9   ;;  %61 = vperm.xlu0 %1702, %v1837_v13  }
  0x57   :  { %1691 = vset.pattern.permute.xlu1 %v1753_v8  ;;  %382 = vperm.xlu0 %1702, %v348_v23  }
  0x58   :  { %417 = vperm.xlu1 %1691, %v355_v24  }
  0x5b   :  { %51 = vperm.xlu0 %1702, %v1847_v15  }
  0x5c   :  { %76 = vperm.xlu1 %1691, %v34_v25  }
  0x5f   :  { %372 = vperm.xlu0 %1702, %v346_v26  }
  0x60   :  { %1692 = vset.pattern.permute.xlu1 %v1752_v3 }
  0x61   :  { %169 = vperm.xlu1 %1692, %v34_v25  }
  0x63   :  { %367 = vperm.xlu0 %1702, %v345_v27   ;;  %v1486_v27 = vld [vmem:[%s2319_s3 + $0x1d8] sm:$0xff] }
  0x65   :  { %1693 = vset.pattern.permute.xlu1 %v1751_v2 }
  0x66   :  { %269 = vperm.xlu1 %1693, %v34_v25  }
  0x67   :  { %590 = vperm.xlu0 %1702, %v1410_v28  }
  0x6a   :  { %273 = vperm.xlu1 %1693, %v1821_v10  }
  0x6b   :  { %580 = vperm.xlu0 %1702, %v1408_v29  }
  0x6e   :  { %1694 = vset.pattern.permute.xlu1 %v1753_v8 }
  0x6f   :  { %407 = vperm.xlu1 %1694, %v353_v30   ;;  %570 = vperm.xlu0 %1702, %v1406_v31  }
  0x73   :  { %66 = vperm.xlu1 %1694, %v32_v32   ;;  %560 = vperm.xlu0 %1702, %v1404_v33  }
  0x77   :  { %1695 = vset.pattern.permute.xlu1 %v1752_v3  ;;  %550 = vperm.xlu0 %1702, %v1402_v34  }
  0x78   :  { %161 = vperm.xlu1 %1695, %v32_v32  }
  0x7b   :  { %540 = vperm.xlu0 %1702, %v1400_v35   ;;  %v347_v35 = vld [vmem:[%s2319_s3 + $0x18] sm:$0xff] }
  0x7c   :  { %1696 = vset.pattern.permute.xlu1 %v1751_v2 }
  0x7d   :  { %261 = vperm.xlu1 %1696, %v32_v32  }
  0x7f   :  { %530 = vperm.xlu0 %1702, %v1398_v36  }
  0x80   :  { %v1931_v37 = vpop.permute.xlu1 %201  ;;  %v1933_v38 = vpop.permute.xlu0 %301 }
  0x81   :  { %265 = vperm.xlu1 %1696, %v1831_v12   ;;  %v310_v12 = vsub.s32 2, %v1990_v61  ;;  %v226_v18 = vmul.f32 %v2013_v11, %v1931_v37 }
  0x83   :  { %520 = vperm.xlu0 %1702, %v1396_v39   ;;  %v2028_v19 = vrot.slane %v27_v5, %v310_v12  ;;  %v1407_v5 = vld [vmem:[%s2319_s3 + $0xe0] sm:$0xff] }
  0x84   :  { %v1942_v41 = vpop.permute.xlu1 %205  ;;  %v1944_v42 = vpop.permute.xlu0 %293 }
  0x85   :  { %1697 = vset.pattern.permute.xlu1 %v1753_v8  ;;  %v326_v22 = vmul.f32 %v2028_v19, %v1933_v38  ;;  %v227_v25 = vmul.f32 %v2013_v11, %v1942_v41  ;;  %v324_v41 = vmul.f32 %v2028_v19, %v1944_v42  ;;  %v1480_v42 = vld [vmem:[%s2319_s3 + $0x1a8] sm:$0xff] }
  0x86   :  { %397 = vperm.xlu1 %1697, %v351_v40  }
  0x87   :  { %873 = vperm.xlu0 %1702, %v1450_v43   ;;  %v1482_v43 = vld [vmem:[%s2319_s3 + $0x1b8] sm:$0xff] }
  0x88   :  { %v1953_v45 = vpop.permute.xlu0 %289 }
  0x89   :  { %v1958_v47 = vpop.permute.xlu1 %305 }
  0x8a   :  { %56 = vperm.xlu1 %1697, %v30_v44   ;;  %v327_v32 = vmul.f32 %v2028_v19, %v1958_v47 }
  0x8b   :  { %863 = vperm.xlu0 %1702, %v1448_v46  }
  0x8d   :  { %v1963_v49 = vpop.permute.xlu0 %185 }
  0x8e   :  { %v1965_v50 = vpop.permute.xlu1 %106  ;;  %1698 = vset.pattern.permute.xlu1 %v1752_v3 }
  0x8f   :  { %153 = vperm.xlu1 %1698, %v30_v44   ;;  %853 = vperm.xlu0 %1702, %v1446_v48   ;;  %v140_v38 = vmul.f32 %v2021_v14, %v1965_v50  ;;  %v344_v48 = vld [vmem:[%s2319_s3] sm:$0xff] }
  0x91   :  { %v1971_v52 = vpop.permute.xlu0 %181 }
  0x93   :  { %v194_v53 = vpop.permute.xlu1 %193  ;;  %1699 = vset.pattern.permute.xlu1 %v1751_v2  ;;  %843 = vperm.xlu0 %1702, %v1444_v51  }
  0x94   :  { %253 = vperm.xlu1 %1699, %v30_v44   ;;  %v224_v33 = vmul.f32 %v2013_v11, %v194_v53 }
  0x95   :  { %v1977_v55 = vpop.permute.xlu0 %173 }
  0x96   :  { %v240_v44 = vadd.f32 %v224_v33, %v140_v38  ;;  %v1395_v38 = vld [vmem:[%s2319_s3 + $0x80] sm:$0xff] }
  0x97   :  { %v1979_v57 = vpop.permute.xlu1 %197  ;;  %833 = vperm.xlu0 %1702, %v1442_v54  }
  0x98   :  { %257 = vperm.xlu1 %1699, %v1837_v13   ;;  %v1490_v13 = vld [vmem:[%s2319_s3 + $0x1f8] sm:$0xff]  ;;  %v225_v46 = vmul.f32 %v2013_v11, %v1979_v57  ;;  %v340_v56 = vadd.f32 %v324_v41, %v240_v44  ;;  %v1409_v57 = vld [vmem:[%s2319_s3 + $0xf0] sm:$0xff]  ;;  %v1447_v44 = vld [vmem:[%s2319_s3 + $0x160] sm:$0xff] }
  0x99   :  { %v1985_v59 = vpop.permute.xlu0 %165  ;;  %v1449_v41 = vld [vmem:[%s2319_s3 + $0x170] sm:$0xff] }
  0x9b   :  { %823 = vperm.xlu0 %1702, %v1440_v58  }
  0x9c   :  { %v1992_v62 = vpop.permute.xlu1 %297  ;;  %1700 = vset.pattern.permute.xlu1 %v1753_v8 }
  0x9d   :  { %387 = vperm.xlu1 %1700, %v349_v60   ;;  %v1998_v0 = vpop.permute.xlu0 %157  ;;  %v325_v54 = vmul.f32 %v2028_v19, %v1992_v62  ;;  %v1478_v62 = vld [vmem:[%s2319_s3 + $0x198] sm:$0xff] }
  0x9f   :  { %813 = vperm.xlu0 %1702, %v1438_v63   ;;  %v1705_v63 = vld [vmem:[%s2318_s2] sm:$0xff]  }
  0xa0   :  { %1572 = vmatprep.mubr.bf16.mxu0 %v1705_v63 }
  0xa1   :  { %v433_v9 = vpop.permute.xlu1 %432  ;;  %46 = vperm.xlu1 %1700, %v28_v1   ;;  %v2011_v10 = vpop.permute.xlu0 %149 }
  0xa3   :  { %803 = vperm.xlu0 %1702, %v1436_v6  }
  0xa5   :  { %v2023_v16 = vpop.permute.xlu1 %96  ;;  %1701 = vset.pattern.permute.xlu1 %v1752_v3 }
  0xa6   :  { %v117_v17 = vpop.permute.xlu0 %116  ;;  %145 = vperm.xlu1 %1701, %v28_v1  }
  0xa7   :  { %v142_v20 = vmul.f32 %v2021_v14, %v117_v17  ;;  %1156 = vperm.xlu0 %1702, %v1490_v13   ;;  %v1476_v13 = vld [vmem:[%s2319_s3 + $0x188] sm:$0xff] }
  0xa9   :  { %v242_v23 = vadd.f32 %v226_v18, %v142_v20  ;;  %v2036_v24 = vpop.permute.xlu1 %101  ;;  %v1405_v18 = vld [vmem:[%s2319_s3 + $0xd0] sm:$0xff] }
  0xaa   :  { %v122_v3 = vpop.permute.xlu0 %121  ;;  %1703 = vset.pattern.permute.xlu1 %v1751_v2  ;;  %v1484_v2 = vld [vmem:[%s2319_s3 + $0x1c8] sm:$0xff] }
  0xab   :  { %v143_v26 = vmul.f32 %v2021_v14, %v122_v3  ;;  %1146 = vperm.xlu0 %1702, %v1488_v21   ;;  %245 = vperm.xlu1 %1703, %v28_v1   ;;  %v342_v28 = vadd.f32 %v326_v22, %v242_v23  ;;  %v1403_v21 = vld [vmem:[%s2319_s3 + $0xc0] sm:$0xff]  ;;  %v1401_v23 = vld [vmem:[%s2319_s3 + $0xb0] sm:$0xff]  ;;  %v222_v3 = vmul.f32 %v2013_v11, %v1963_v49 }
  0xac   :  { %v323_v49 = vmul.f32 %v2028_v19, %v1953_v45 }
  0xad   :  { %v243_v29 = vadd.f32 %v227_v25, %v143_v26  ;;  %v454_v36 = vadd.f32 %v433_v9, %v342_v28  ;;  %v138_v25 = vmul.f32 %v2021_v14, %v2023_v16  ;;  %v139_v28 = vmul.f32 %v2021_v14, %v2036_v24  ;;  %v1397_v24 = vld [vmem:[%s2319_s3 + $0x90] sm:$0xff] }
  0xae   :  { %v2045_v30 = vpop.permute.xlu1 %189  ;;  %v112_v31 = vpop.permute.xlu0 %111 }
  0xaf   :  { %1136 = vperm.xlu0 %1702, %v1486_v27   ;;  %249 = vperm.xlu1 %1703, %v1847_v15   ;;  %v343_v34 = vadd.f32 %v327_v32, %v243_v29  ;;  %v141_v39 = vmul.f32 %v2021_v14, %v112_v31  ;;  %v470_v50 = vmax.f32 %v454_v36, 0.0  ;;  %v223_v26 = vmul.f32 %v2013_v11, %v2045_v30  ;;  %v1399_v31 = vld [vmem:[%s2319_s3 + $0xa0] sm:$0xff] }
  0xb0   :  { %v238_v32 = vadd.f32 %v222_v3, %v138_v25  ;;  %v219_v3 = vmul.f32 %v2013_v11, %v1977_v55  ;;  %v1487_v55 = vld [vmem:[%s2319_s3 + $0x1e0] sm:$0xff] }
  0xb1   :  { %v241_v51 = vadd.f32 %v225_v46, %v141_v39 }
  0xb2   :  { %v438_v37 = vpop.permute.xlu0 %437 }
  0xb3   :  { %v455_v40 = vadd.f32 %v438_v37, %v343_v34  ;;  %v286_v15 = vpop.permute.xlu1 %285  ;;  %1126 = vperm.xlu0 %1702, %v1484_v2   ;;  %1704 = vset.pattern.permute.xlu1 %v1753_v8  ;;  %v341_v60 = vadd.f32 %v325_v54, %v241_v51  ;;  %v239_v2 = vadd.f32 %v223_v26, %v139_v28  ;;  %v1445_v51 = vld [vmem:[%s2319_s3 + $0x150] sm:$0xff] }
  0xb4   :  { %377 = vperm.xlu1 %1704, %v347_v35   ;;  %v322_v29 = vmul.f32 %v2028_v19, %v286_v15 }
  0xb5   :  { %v471_v47 = vmax.f32 %v455_v40, 0.0  ;;  %v339_v35 = vadd.f32 %v323_v49, %v239_v2 }
  0xb6   :  { %v87_v22 = vpop.permute.xlu0 %86  ;;  %v338_v34 = vadd.f32 %v322_v29, %v238_v32 }
  0xb7   :  { %1116 = vperm.xlu0 %1702, %v1482_v43   ;;  %v495_v8 = vpack.c.bf16 %v471_v47, %v470_v50  ;;  %v136_v46 = vmul.f32 %v2021_v14, %v87_v22  ;;  %v1435_v22 = vld [vmem:[%s2319_s3 + $0x100] sm:$0xff] }
  0xb8   :  { %v423_v53 = vpop.permute.xlu1 %422  ;;  %362 = vperm.xlu1 %1704, %v344_v48  }
  0xb9   :  { %1556 = vmatprep.subr.bf16.mxu0 %v495_v8  ;;  %v452_v58 = vadd.f32 %v423_v53, %v340_v56  ;;  %v221_v53 = vmul.f32 %v2013_v11, %v1971_v52  ;;  %v1441_v52 = vld [vmem:[%s2319_s3 + $0x130] sm:$0xff] }
  0xba   :  { %1557 = vmatpush3.bf16.msra.mxu0 %v495_v8  ;;  %v413_v33 = vpop.permute.xlu0 %412 }
  0xbb   :  { %1106 = vperm.xlu0 %1702, %v1480_v42   ;;  %v468_v6 = vmax.f32 %v452_v58, 0.0  ;;  %v450_v30 = vadd.f32 %v413_v33, %v338_v34 }
  0xbc   :  { %v428_v1 = vpop.permute.xlu1 %427  ;;  %585 = vperm.xlu1 %1704, %v1409_v57  }
  0xbd   :  { %v453_v4 = vadd.f32 %v428_v1, %v341_v60  ;;  %v466_v45 = vmax.f32 %v450_v30, 0.0  ;;  %v1443_v60 = vld [vmem:[%s2319_s3 + $0x140] sm:$0xff] }
  0xbe   :  { %v82_v8 = vpop.permute.xlu0 %81 }
  0xbf   :  { %v469_v9 = vmax.f32 %v453_v4, 0.0  ;;  %1096 = vperm.xlu0 %1702, %v1478_v62   ;;  %v135_v25 = vmul.f32 %v2021_v14, %v82_v8  ;;  %v217_v8 = vmul.f32 %v2013_v11, %v1985_v59 }
  0xc0   :  { %v92_v12 = vpop.permute.xlu1 %91  ;;  %575 = vperm.xlu1 %1704, %v1407_v5  }
  0xc1   :  { %v494_v17 = vpack.c.bf16 %v469_v9, %v468_v6  ;;  %v137_v42 = vmul.f32 %v2021_v14, %v92_v12  ;;  %v235_v32 = vadd.f32 %v219_v3, %v135_v25  ;;  %v215_v25 = vmul.f32 %v2013_v11, %v1998_v0 }
  0xc2   :  { %v403_v1 = vpop.permute.xlu0 %402 }
  0xc3   :  { %1086 = vperm.xlu0 %1702, %v1476_v13   ;;  %1558 = vmatprep.subr.bf16.mxu0 %v494_v17  ;;  %v237_v63 = vadd.f32 %v221_v53, %v137_v42  ;;  %v1439_v13 = vld [vmem:[%s2319_s3 + $0x120] sm:$0xff] }
  0xc4   :  { %565 = vperm.xlu1 %1704, %v1405_v18   ;;  %1559 = vmatpush3.bf16.msra.mxu0 %v494_v17 }
  0xc5   :  { %v178_v20 = vpop.permute.xlu1 %177 }
  0xc6   :  { %v220_v47 = vmul.f32 %v2013_v11, %v178_v20  ;;  %v1437_v20 = vld [vmem:[%s2319_s3 + $0x110] sm:$0xff]  ;;  %v72_v29 = vpop.permute.xlu0 %71 }
  0xc7   :  { %v133_v53 = vmul.f32 %v2021_v14, %v72_v29 }
  0xc8   :  { %555 = vperm.xlu1 %1704, %v1403_v21   ;;  %v236_v54 = vadd.f32 %v220_v47, %v136_v46  ;;  %v1479_v46 = vld [vmem:[%s2319_s3 + $0x1a0] sm:$0xff] }
  0xca   :  { %v278_v27 = vpop.permute.xlu1 %277  ;;  %v393_v34 = vpop.permute.xlu0 %392 }
  0xcb   :  { %v320_v48 = vmul.f32 %v2028_v19, %v278_v27 }
  0xcc   :  { %545 = vperm.xlu1 %1704, %v1401_v23  }
  0xcd   :  { %v336_v56 = vadd.f32 %v320_v48, %v236_v54  ;;  %v1477_v54 = vld [vmem:[%s2319_s3 + $0x190] sm:$0xff] }
  0xce   :  { %v282_v16 = vpop.permute.xlu1 %281 }
  0xcf   :  { %v321_v57 = vmul.f32 %v2028_v19, %v282_v16  ;;  %v448_v62 = vadd.f32 %v403_v1, %v336_v56 }
  0xd0   :  { %535 = vperm.xlu1 %1704, %v1399_v31   ;;  %v1489_v31 = vld [vmem:[%s2319_s3 + $0x1f0] sm:$0xff] }
  0xd1   :  { %v337_v4 = vadd.f32 %v321_v57, %v237_v63  ;;  %v464_v9 = vmax.f32 %v448_v62, 0.0  ;;  %v1475_v63 = vld [vmem:[%s2319_s3 + $0x180] sm:$0xff] }
  0xd3   :  { %v418_v36 = vpop.permute.xlu1 %417 }
  0xd4   :  { %v451_v37 = vadd.f32 %v418_v36, %v339_v35  ;;  %525 = vperm.xlu1 %1704, %v1397_v24   ;;  %v1485_v36 = vld [vmem:[%s2319_s3 + $0x1d0] sm:$0xff] }
  0xd6   :  { %v467_v39 = vmax.f32 %v451_v37, 0.0 }
  0xd7   :  { %v77_v40 = vpop.permute.xlu1 %76 }
  0xd8   :  { %v493_v15 = vpack.c.bf16 %v467_v39, %v466_v45  ;;  %515 = vperm.xlu1 %1704, %v1395_v38   ;;  %v134_v26 = vmul.f32 %v2021_v14, %v77_v40  ;;  %v1483_v40 = vld [vmem:[%s2319_s3 + $0x1c0] sm:$0xff] }
  0xda   :  { %1560 = vmatprep.subr.bf16.mxu0 %v493_v15 }
  0xdb   :  { %1561 = vmatpush3.bf16.msra.mxu0 %v493_v15 }
  0xdc   :  { %v170_v43 = vpop.permute.xlu1 %169  ;;  %868 = vperm.xlu1 %1704, %v1449_v41   ;;  %v1481_v41 = vld [vmem:[%s2319_s3 + $0x1b0] sm:$0xff] }
  0xdd   :  { %v218_v23 = vmul.f32 %v2013_v11, %v170_v43 }
  0xdf   :  { %v234_v49 = vadd.f32 %v218_v23, %v134_v26  ;;  %v213_v26 = vmul.f32 %v2013_v11, %v2011_v10 }
  0xe0   :  { %858 = vperm.xlu1 %1704, %v1447_v44  }
  0xe1   :  { %v270_v50 = vpop.permute.xlu1 %269 }
  0xe2   :  { %v318_v27 = vmul.f32 %v2028_v19, %v270_v50 }
  0xe4   :  { %848 = vperm.xlu1 %1704, %v1445_v51   ;;  %v334_v2 = vadd.f32 %v318_v27, %v234_v49  ;;  %v62_v51 = vpop.permute.xlu0 %61 }
  0xe5   :  { %v274_v58 = vpop.permute.xlu1 %273  ;;  %v131_v27 = vmul.f32 %v2021_v14, %v62_v51  ;;  %v1710_v51 = vld [vmem:[%s2318_s2 + $0x28] sm:$0xff]  }
  0xe6   :  { %v319_v16 = vmul.f32 %v2028_v19, %v274_v58  ;;  %v446_v24 = vadd.f32 %v393_v34, %v334_v2 }
  0xe8   :  { %838 = vperm.xlu1 %1704, %v1443_v60   ;;  %v335_v30 = vadd.f32 %v319_v16, %v235_v32  ;;  %v462_v38 = vmax.f32 %v446_v24, 0.0  ;;  %v233_v60 = vadd.f32 %v217_v8, %v133_v53  ;;  %v383_v1 = vpop.permute.xlu0 %382  ;;  %v231_v16 = vadd.f32 %v215_v25, %v131_v27  ;;  %v1711_v8 = vld [vmem:[%s2318_s2 + $0x30] sm:$0xff]   ;;  %v1712_v53 = vld [vmem:[%s2318_s2 + $0x38] sm:$0xff]  }
  0xea   :  { %v408_v5 = vpop.permute.xlu1 %407 }
  0xeb   :  { %v449_v6 = vadd.f32 %v408_v5, %v337_v4  ;;  %v1369_v5 = vld [vmem:[#allocation2] sm:$0x1] }
  0xec   :  { %828 = vperm.xlu1 %1704, %v1441_v52  }
  0xed   :  { %v465_v12 = vmax.f32 %v449_v6, 0.0 }
  0xee   :  { %v67_v17 = vpop.permute.xlu1 %66 }
  0xef   :  { %v492_v18 = vpack.c.bf16 %v465_v12, %v464_v9  ;;  %v132_v47 = vmul.f32 %v2021_v14, %v67_v17 }
  0xf0   :  { %818 = vperm.xlu1 %1704, %v1439_v13  }
  0xf1   :  { %1562 = vmatprep.subr.bf16.mxu0 %v492_v18 }
  0xf2   :  { %1563 = vmatpush3.bf16.msra.mxu0 %v492_v18 }
  0xf3   :  { %v162_v21 = vpop.permute.xlu1 %161 }
  0xf4   :  { %808 = vperm.xlu1 %1704, %v1437_v20   ;;  %v216_v44 = vmul.f32 %v2013_v11, %v162_v21  ;;  %v52_v20 = vpop.permute.xlu0 %51 }
  0xf6   :  { %v232_v42 = vadd.f32 %v216_v44, %v132_v47  ;;  %v1707_v47 = vld [vmem:[%s2318_s2 + $0x10] sm:$0xff]  }
  0xf8   :  { %v262_v28 = vpop.permute.xlu1 %261  ;;  %798 = vperm.xlu1 %1704, %v1435_v22   ;;  %v373_v32 = vpop.permute.xlu0 %372 }
  0xf9   :  { %v316_v48 = vmul.f32 %v2028_v19, %v262_v28  ;;  %v129_v28 = vmul.f32 %v2021_v14, %v52_v20 }
  0xfb   :  { %v332_v56 = vadd.f32 %v316_v48, %v232_v42  ;;  %v1708_v48 = vld [vmem:[%s2318_s2 + $0x18] sm:$0xff]   ;;  %v1713_v42 = vld [vmem:[%s2318_s2 + $0x40] sm:$0xff]  }
  0xfc   :  { %v266_v33 = vpop.permute.xlu1 %265  ;;  %1151 = vperm.xlu1 %1704, %v1489_v31   ;;  %1604 = vmatprep.mubr.bf16.mxu1 %v1713_v42 }
  0xfd   :  { %v317_v57 = vmul.f32 %v2028_v19, %v266_v33  ;;  %v444_v62 = vadd.f32 %v383_v1, %v332_v56  ;;  %v229_v33 = vadd.f32 %v213_v26, %v129_v28 }
  0xff   :  { %v333_v59 = vadd.f32 %v317_v57, %v233_v60  ;;  %v460_v6 = vmax.f32 %v444_v62, 0.0 }
 0x100   :  { %1141 = vperm.xlu1 %1704, %v1487_v55  }
 0x101   :  { %v398_v35 = vpop.permute.xlu1 %397 }
 0x102   :  { %v447_v37 = vadd.f32 %v398_v35, %v335_v30 }
 0x104   :  { %v463_v45 = vmax.f32 %v447_v37, 0.0  ;;  %1131 = vperm.xlu1 %1704, %v1485_v36  }
 0x105   :  { %v57_v39 = vpop.permute.xlu1 %56 }
 0x106   :  { %v491_v15 = vpack.c.bf16 %v463_v45, %v462_v38  ;;  %v130_v21 = vmul.f32 %v2021_v14, %v57_v39  ;;  %v368_v38 = vpop.permute.xlu0 %367 }
 0x108   :  { %1121 = vperm.xlu1 %1704, %v1483_v40   ;;  %1564 = vmatprep.subr.bf16.mxu0 %v491_v15 }
 0x109   :  { %1565 = vmatpush3.bf16.msra.mxu0 %v491_v15 }
 0x10a   :  { %v154_v43 = vpop.permute.xlu1 %153  ;;  %v591_v60 = vpop.permute.xlu0 %590 }
 0x10b   :  { %v214_v18 = vmul.f32 %v2013_v11, %v154_v43 }
 0x10c   :  { %1111 = vperm.xlu1 %1704, %v1481_v41  }
 0x10d   :  { %v230_v3 = vadd.f32 %v214_v18, %v130_v21 }
 0x10f   :  { %v254_v50 = vpop.permute.xlu1 %253 }
 0x110   :  { %1101 = vperm.xlu1 %1704, %v1479_v46   ;;  %v314_v22 = vmul.f32 %v2028_v19, %v254_v50  ;;  %v1709_v50 = vld [vmem:[%s2318_s2 + $0x20] sm:$0xff]  }
 0x112   :  { %v330_v29 = vadd.f32 %v314_v22, %v230_v3 }
 0x113   :  { %v258_v58 = vpop.permute.xlu1 %257 }
 0x114   :  { %1091 = vperm.xlu1 %1704, %v1477_v54   ;;  %v315_v31 = vmul.f32 %v2028_v19, %v258_v58  ;;  %v442_v34 = vadd.f32 %v373_v32, %v330_v29 }
 0x116   :  { %v331_v30 = vadd.f32 %v315_v31, %v231_v16  ;;  %v458_v39 = vmax.f32 %v442_v34, 0.0 }
 0x118   :  { %v388_v4 = vpop.permute.xlu1 %387  ;;  %1081 = vperm.xlu1 %1704, %v1475_v63  }
 0x119   :  { %v445_v52 = vadd.f32 %v388_v4, %v333_v59  ;;  %v581_v4 = vpop.permute.xlu0 %580 }
 0x11b   :  { %v461_v9 = vmax.f32 %v445_v52, 0.0 }
 0x11c   :  { %1372 = vperm.xlu1 %1704, %v1369_v5   ;;  %v47_v12 = vpop.permute.xlu1 %46 }
 0x11d   :  { %v490_v13 = vpack.c.bf16 %v461_v9, %v460_v6  ;;  %v128_v0 = vmul.f32 %v2021_v14, %v47_v12  ;;  %v571_v12 = vpop.permute.xlu0 %570 }
 0x11f   :  { %1566 = vmatprep.subr.bf16.mxu0 %v490_v13 }
 0x120   :  { %1567 = vmatpush3.bf16.msra.mxu0 %v490_v13 }
 0x121   :  { %v146_v17 = vpop.permute.xlu1 %145  ;;  %v561_v21 = vpop.permute.xlu0 %560 }
 0x122   :  { %v212_v55 = vmul.f32 %v2013_v11, %v146_v17 }
 0x124   :  { %v228_v36 = vadd.f32 %v212_v55, %v128_v0 }
 0x126   :  { %v246_v23 = vpop.permute.xlu1 %245 }
 0x127   :  { %v312_v10 = vmul.f32 %v2028_v19, %v246_v23 }
 0x129   :  { %v328_v15 = vadd.f32 %v312_v10, %v228_v36 }
 0x12a   :  { %v250_v49 = vpop.permute.xlu1 %249 }
 0x12b   :  { %v313_v2 = vmul.f32 %v2028_v19, %v250_v49  ;;  %v1706_v19 = vld [vmem:[%s2318_s2 + $0x8] sm:$0xff]  }
 0x12d   :  { %v329_v24 = vadd.f32 %v313_v2, %v229_v33  ;;  %v551_v2 = vpop.permute.xlu0 %550 }
 0x12f   :  { %v378_v35 = vpop.permute.xlu1 %377  ;;  %v441_v45 = vadd.f32 %v368_v38, %v329_v24 }
 0x130   :  { %v443_v37 = vadd.f32 %v378_v35, %v331_v30 }
 0x131   :  { %v457_v11 = vmax.f32 %v441_v45, 0.0 }
 0x132   :  { %v459_v40 = vmax.f32 %v443_v37, 0.0  ;;  %v541_v37 = vpop.permute.xlu0 %540 }
 0x133   :  { %v363_v41 = vpop.permute.xlu1 %362 }
 0x134   :  { %v489_v43 = vpack.c.bf16 %v459_v40, %v458_v39  ;;  %v440_v44 = vadd.f32 %v363_v41, %v328_v15 }
 0x136   :  { %v456_v46 = vmax.f32 %v440_v44, 0.0  ;;  %1568 = vmatprep.subr.bf16.mxu0 %v489_v43 }
 0x137   :  { %1569 = vmatpush3.bf16.msra.mxu0 %v489_v43  ;;  %v586_v1 = vpop.permute.xlu1 %585 }
 0x138   :  { %v488_v14 = vpack.c.bf16 %v457_v11, %v456_v46  ;;  %v531_v11 = vpop.permute.xlu0 %530 }
 0x13a   :  { %1570 = vmatprep.subr.bf16.mxu0 %v488_v14 }
 0x13b   :  { %1571 = vmatpush3.bf16.msra.mxu0 %v488_v14  ;;  %v576_v5 = vpop.permute.xlu1 %575 }
 0x13c   :  { %v521_v42 = vpop.permute.xlu0 %520 }
 0x13e   :  { %1573 = vmatmul.mubr.bf16.vlgmr.msra.gmra.mxu0 %v1706_v19 }
 0x13f   :  { %1576 = vmatprep.mubr.bf16.mxu0 %v1707_v47  ;;  %v566_v17 = vpop.permute.xlu1 %565 }
 0x143   :  { %v556_v3 = vpop.permute.xlu1 %555 }
 0x146   :  { %1577 = vmatmul.mubr.bf16.gmra.mxu0 %v1708_v48 }
 0x147   :  { %1580 = vmatprep.mubr.bf16.mxu0 %v1709_v50  ;;  %v546_v0 = vpop.permute.xlu1 %545 }
 0x14b   :  { %v536_v40 = vpop.permute.xlu1 %535 }
 0x14e   :  { %1581 = vmatmul.mubr.bf16.gmra.mxu0 %v1710_v51 }
 0x14f   :  { %1584 = vmatprep.mubr.bf16.mxu0 %v1711_v8  ;;  %v526_v47 = vpop.permute.xlu1 %525 }
 0x156   :  { %1585 = vmatmul.mubr.bf16.gmra.mxu0 %v1712_v53 }
 0x1fe   :  { %v2227_v54 = vpop.f32.mrf.mxu0 }
 0x1ff   :  { %v684_v8 = vadd.f32 %v2227_v54, %v526_v47  ;;  %v1714_v54 = vld [vmem:[%s2318_s2 + $0x48] sm:$0xff]  }
 0x200   :  { %v2229_v56 = vpop.f32.mrf.mxu0 }
 0x202   :  { %v1575_v57 = vpop.f32.mrf.mxu0 }
 0x203   :  { %v687_v48 = vadd.f32 %v1575_v57, %v531_v11 }
 0x204   :  { %v2231_v58 = vpop.f32.mrf.mxu0 }
 0x206   :  { %v1578_v63 = vpop.f32.mrf.mxu0 }
 0x207   :  { %v700_v15 = vadd.f32 %v1578_v63, %v546_v0  ;;  %v679_v63 = vadd.f32 %v2231_v58, %v521_v42  ;;  %v1715_v58 = vld [vmem:[%s2318_s2 + $0x50] sm:$0xff]  }
 0x208   :  { %v691_v62 = vpop.f32.mrf.mxu0 }
 0x209   :  { %v744_v14 = vmax.f32 %v700_v15, 0.0  ;;  %v692_v19 = vadd.f32 %v691_v62, %v536_v40  ;;  %v739_v57 = vmax.f32 %v679_v63, 0.0 }
 0x20a   :  { %v1579_v59 = vpop.f32.mrf.mxu0 }
 0x20b   :  { %v703_v38 = vadd.f32 %v1579_v59, %v551_v2  ;;  %v742_v53 = vmax.f32 %v692_v19, 0.0  ;;  %v516_v59 = vpop.permute.xlu1 %515 }
 0x20c   :  { %v694_v52 = vpop.f32.mrf.mxu0  ;;  %v676_v62 = vadd.f32 %v2229_v56, %v516_v59  ;;  %v1716_v56 = vld [vmem:[%s2318_s2 + $0x58] sm:$0xff]  }
 0x20d   :  { %v745_v43 = vmax.f32 %v703_v38, 0.0  ;;  %v695_v44 = vadd.f32 %v694_v52, %v541_v37 }
 0x20e   :  { %v1582_v6 = vpop.f32.mrf.mxu0 }
 0x20f   :  { %v716_v16 = vadd.f32 %v1582_v6, %v566_v17  ;;  %v774_v50 = vpack.c.bf16 %v745_v43, %v744_v14  ;;  %v743_v51 = vmax.f32 %v695_v44, 0.0  ;;  %v1720_v17 = vld [vmem:[%s2318_s2 + $0x78] sm:$0xff]  }
 0x210   :  { %v707_v9 = vpop.f32.mrf.mxu0 }
 0x211   :  { %v748_v35 = vmax.f32 %v716_v16, 0.0  ;;  %v708_v36 = vadd.f32 %v707_v9, %v556_v3  ;;  %v1717_v9 = vld [vmem:[%s2318_s2 + $0x60] sm:$0xff]   ;;  %v874_v3 = vpop.permute.xlu0 %873 }
 0x212   :  { %v1583_v13 = vpop.f32.mrf.mxu0 }
 0x213   :  { %v719_v29 = vadd.f32 %v1583_v13, %v571_v12  ;;  %v746_v41 = vmax.f32 %v708_v36, 0.0  ;;  %v1718_v12 = vld [vmem:[%s2318_s2 + $0x68] sm:$0xff]   ;;  %v1719_v13 = vld [vmem:[%s2318_s2 + $0x70] sm:$0xff]  }
 0x214   :  { %v710_v18 = vpop.f32.mrf.mxu0 }
 0x215   :  { %v749_v10 = vmax.f32 %v719_v29, 0.0  ;;  %v711_v24 = vadd.f32 %v710_v18, %v561_v21  ;;  %v1721_v18 = vld [vmem:[%s2318_s2 + $0x80] sm:$0xff]   ;;  %v864_v29 = vpop.permute.xlu0 %863 }
 0x216   :  { %v1586_v20 = vpop.f32.mrf.mxu0  ;;  %1636 = vmatprep.mubr.bf16.mxu0 %v1721_v18 }
 0x217   :  { %v732_v23 = vadd.f32 %v1586_v20, %v586_v1  ;;  %v776_v45 = vpack.c.bf16 %v749_v10, %v748_v35  ;;  %v747_v39 = vmax.f32 %v711_v24, 0.0  ;;  %v773_v1 = vpack.c.bf16 %v743_v51, %v742_v53 }
 0x218   :  { %v723_v22 = vpop.f32.mrf.mxu0 }
 0x219   :  { %v724_v26 = vadd.f32 %v723_v22, %v576_v5  ;;  %v752_v31 = vmax.f32 %v732_v23, 0.0  ;;  %v775_v46 = vpack.c.bf16 %v747_v39, %v746_v41  ;;  %v738_v5 = vmax.f32 %v676_v62, 0.0  ;;  %v854_v16 = vpop.permute.xlu0 %853 }
 0x21a   :  { %v1587_v25 = vpop.f32.mrf.mxu0 }
 0x21b   :  { %v735_v27 = vadd.f32 %v1587_v25, %v591_v60  ;;  %v750_v33 = vmax.f32 %v724_v26, 0.0  ;;  %v741_v60 = vmax.f32 %v687_v48, 0.0  ;;  %v771_v6 = vpack.c.bf16 %v739_v57, %v738_v5  ;;  %v869_v26 = vpop.permute.xlu1 %868 }
 0x21c   :  { %v726_v28 = vpop.f32.mrf.mxu0 }
 0x21d   :  { %v753_v49 = vmax.f32 %v735_v27, 0.0  ;;  %v727_v32 = vadd.f32 %v726_v28, %v581_v4  ;;  %v740_v4 = vmax.f32 %v684_v8, 0.0  ;;  %v844_v10 = vpop.permute.xlu0 %843 }
 0x21f   :  { %v751_v55 = vmax.f32 %v727_v32, 0.0  ;;  %v778_v34 = vpack.c.bf16 %v753_v49, %v752_v31  ;;  %v772_v52 = vpack.c.bf16 %v741_v60, %v740_v4  ;;  %v859_v49 = vpop.permute.xlu1 %858 }
 0x221   :  { %v777_v30 = vpack.c.bf16 %v751_v55, %v750_v33  ;;  %1588 = vmatprep.subr.bf16.mxu1 %v778_v34  ;;  %v834_v43 = vpop.permute.xlu0 %833 }
 0x222   :  { %1589 = vmatpush3.bf16.msra.mxu1 %v778_v34 }
 0x223   :  { %1590 = vmatprep.subr.bf16.mxu1 %v777_v30  ;;  %v849_v55 = vpop.permute.xlu1 %848 }
 0x225   :  { %v824_v53 = vpop.permute.xlu0 %823 }
 0x226   :  { %1591 = vmatpush3.bf16.msra.mxu1 %v777_v30 }
 0x227   :  { %1592 = vmatprep.subr.bf16.mxu1 %v776_v45  ;;  %v839_v35 = vpop.permute.xlu1 %838 }
 0x229   :  { %v814_v5 = vpop.permute.xlu0 %813 }
 0x22a   :  { %1593 = vmatpush3.bf16.msra.mxu1 %v776_v45 }
 0x22b   :  { %1594 = vmatprep.subr.bf16.mxu1 %v775_v46  ;;  %v829_v19 = vpop.permute.xlu1 %828 }
 0x22d   :  { %v804_v18 = vpop.permute.xlu0 %803 }
 0x22e   :  { %1595 = vmatpush3.bf16.msra.mxu1 %v775_v46 }
 0x22f   :  { %1596 = vmatprep.subr.bf16.mxu1 %v774_v50 }
 0x232   :  { %1597 = vmatpush3.bf16.msra.mxu1 %v774_v50 }
 0x233   :  { %1598 = vmatprep.subr.bf16.mxu1 %v773_v1 }
 0x236   :  { %1599 = vmatpush3.bf16.msra.mxu1 %v773_v1  ;;  %v819_v1 = vpop.permute.xlu1 %818 }
 0x237   :  { %1600 = vmatprep.subr.bf16.mxu1 %v772_v52 }
 0x23a   :  { %1601 = vmatpush3.bf16.msra.mxu1 %v772_v52 }
 0x23b   :  { %1602 = vmatprep.subr.bf16.mxu1 %v771_v6 }
 0x23e   :  { %1603 = vmatpush3.bf16.msra.mxu1 %v771_v6 }
 0x241   :  { %1605 = vmatmul.mubr.bf16.vlgmr.msra.gmra.mxu1 %v1714_v54 }
 0x242   :  { %1608 = vmatprep.mubr.bf16.mxu1 %v1715_v58  ;;  %v809_v58 = vpop.permute.xlu1 %808 }
 0x249   :  { %1609 = vmatmul.mubr.bf16.gmra.mxu1 %v1716_v56 }
 0x24a   :  { %1612 = vmatprep.mubr.bf16.mxu1 %v1717_v9 }
 0x251   :  { %1613 = vmatmul.mubr.bf16.gmra.mxu1 %v1718_v12 }
 0x252   :  { %1616 = vmatprep.mubr.bf16.mxu1 %v1719_v13 }
 0x259   :  { %1617 = vmatmul.mubr.bf16.gmra.mxu1 %v1720_v17 }
 0x301   :  { %v2260_v20 = vpop.f32.mrf.mxu1 }
 0x302   :  { %v967_v13 = vadd.f32 %v2260_v20, %v809_v58  ;;  %v1722_v20 = vld [vmem:[%s2318_s2 + $0x88] sm:$0xff]  }
 0x303   :  { %v2262_v21 = vpop.f32.mrf.mxu1 }
 0x305   :  { %v1607_v22 = vpop.f32.mrf.mxu1 }
 0x306   :  { %v970_v56 = vadd.f32 %v1607_v22, %v814_v5 }
 0x307   :  { %v2264_v23 = vpop.f32.mrf.mxu1 }
 0x309   :  { %v1610_v25 = vpop.f32.mrf.mxu1 }
 0x30a   :  { %v983_v59 = vadd.f32 %v1610_v25, %v829_v19  ;;  %v962_v25 = vadd.f32 %v2264_v23, %v804_v18  ;;  %v1723_v23 = vld [vmem:[%s2318_s2 + $0x90] sm:$0xff]  }
 0x30b   :  { %v974_v27 = vpop.f32.mrf.mxu1 }
 0x30c   :  { %v1027_v6 = vmax.f32 %v983_v59, 0.0  ;;  %v975_v54 = vadd.f32 %v974_v27, %v819_v1  ;;  %v1022_v22 = vmax.f32 %v962_v25, 0.0 }
 0x30d   :  { %v1611_v28 = vpop.f32.mrf.mxu1 }
 0x30e   :  { %v986_v42 = vadd.f32 %v1611_v28, %v834_v43  ;;  %v1025_v17 = vmax.f32 %v975_v54, 0.0  ;;  %v799_v28 = vpop.permute.xlu1 %798 }
 0x30f   :  { %v977_v31 = vpop.f32.mrf.mxu1  ;;  %v959_v27 = vadd.f32 %v2262_v21, %v799_v28  ;;  %v1724_v21 = vld [vmem:[%s2318_s2 + $0x98] sm:$0xff]  }
 0x310   :  { %v1028_v62 = vmax.f32 %v986_v42, 0.0  ;;  %v978_v52 = vadd.f32 %v977_v31, %v824_v53 }
 0x311   :  { %v1614_v32 = vpop.f32.mrf.mxu1 }
 0x312   :  { %v999_v44 = vadd.f32 %v1614_v32, %v849_v55  ;;  %v1057_v9 = vpack.c.bf16 %v1028_v62, %v1027_v6  ;;  %v1026_v12 = vmax.f32 %v978_v52, 0.0  ;;  %v1728_v55 = vld [vmem:[%s2318_s2 + $0xb8] sm:$0xff]  }
 0x313   :  { %v990_v2 = vpop.f32.mrf.mxu1 }
 0x314   :  { %v1031_v51 = vmax.f32 %v999_v44, 0.0  ;;  %v991_v8 = vadd.f32 %v990_v2, %v839_v35  ;;  %v1725_v2 = vld [vmem:[%s2318_s2 + $0xa0] sm:$0xff]  }
 0x315   :  { %v1615_v33 = vpop.f32.mrf.mxu1 }
 0x316   :  { %v1002_v39 = vadd.f32 %v1615_v33, %v854_v16  ;;  %v1029_v4 = vmax.f32 %v991_v8, 0.0  ;;  %v1726_v16 = vld [vmem:[%s2318_s2 + $0xa8] sm:$0xff]   ;;  %v1727_v33 = vld [vmem:[%s2318_s2 + $0xb0] sm:$0xff]  }
 0x317   :  { %v993_v34 = vpop.f32.mrf.mxu1 }
 0x318   :  { %v1032_v47 = vmax.f32 %v1002_v39, 0.0  ;;  %v994_v48 = vadd.f32 %v993_v34, %v844_v10  ;;  %v1754_v34 = vmov 0.0  }
 0x319   :  { %v1618_v0 = vpop.f32.mrf.mxu1  ;;  %1652 = vmatprep.subr.bf16.mxu1 %v1754_v34  ;;  %1668 = vmatprep.mubr.msk.bf16.mxu1 %vm1755_vm0, %v1754_v34 }
 0x31a   :  { %v1015_v30 = vadd.f32 %v1618_v0, %v869_v26  ;;  %v1059_v60 = vpack.c.bf16 %v1032_v47, %v1031_v51  ;;  %v1030_v63 = vmax.f32 %v994_v48, 0.0  ;;  %v1056_v26 = vpack.c.bf16 %v1026_v12, %v1025_v17 }
 0x31b   :  { %v1006_v24 = vpop.f32.mrf.mxu1 }
 0x31c   :  { %v1007_v37 = vadd.f32 %v1006_v24, %v859_v49  ;;  %v1035_v40 = vmax.f32 %v1015_v30, 0.0  ;;  %v1058_v57 = vpack.c.bf16 %v1030_v63, %v1029_v4  ;;  %v1021_v49 = vmax.f32 %v959_v27, 0.0 }
 0x31d   :  { %v1619_v36 = vpop.f32.mrf.mxu1 }
 0x31e   :  { %v1018_v38 = vadd.f32 %v1619_v36, %v874_v3  ;;  %v1033_v46 = vmax.f32 %v1007_v37, 0.0  ;;  %v1024_v3 = vmax.f32 %v970_v56, 0.0  ;;  %v1054_v32 = vpack.c.bf16 %v1022_v22, %v1021_v49  ;;  %v1157_v36 = vpop.permute.xlu0 %1156 }
 0x31f   :  { %v1009_v45 = vpop.f32.mrf.mxu1 }
 0x320   :  { %v1036_v15 = vmax.f32 %v1018_v38, 0.0  ;;  %v1010_v41 = vadd.f32 %v1009_v45, %v864_v29  ;;  %v1023_v29 = vmax.f32 %v967_v13, 0.0  ;;  %v1152_v38 = vpop.permute.xlu1 %1151 }
 0x322   :  { %v1061_v11 = vpack.c.bf16 %v1036_v15, %v1035_v40  ;;  %v1034_v14 = vmax.f32 %v1010_v41, 0.0  ;;  %v1055_v31 = vpack.c.bf16 %v1024_v3, %v1023_v29  ;;  %v1147_v40 = vpop.permute.xlu0 %1146 }
 0x324   :  { %v1060_v50 = vpack.c.bf16 %v1034_v14, %v1033_v46  ;;  %1620 = vmatprep.subr.bf16.mxu0 %v1061_v11  ;;  %v1142_v41 = vpop.permute.xlu1 %1141 }
 0x325   :  { %1621 = vmatpush3.bf16.msra.mxu0 %v1061_v11 }
 0x326   :  { %1622 = vmatprep.subr.bf16.mxu0 %v1060_v50  ;;  %v1137_v46 = vpop.permute.xlu0 %1136 }
 0x328   :  { %v1132_v14 = vpop.permute.xlu1 %1131 }
 0x329   :  { %1623 = vmatpush3.bf16.msra.mxu0 %v1060_v50 }
 0x32a   :  { %1624 = vmatprep.subr.bf16.mxu0 %v1059_v60  ;;  %v1127_v50 = vpop.permute.xlu0 %1126 }
 0x32c   :  { %v1122_v53 = vpop.permute.xlu1 %1121 }
 0x32d   :  { %1625 = vmatpush3.bf16.msra.mxu0 %v1059_v60 }
 0x32e   :  { %1626 = vmatprep.subr.bf16.mxu0 %v1058_v57 }
 0x330   :  { %v1112_v54 = vpop.permute.xlu1 %1111 }
 0x331   :  { %1627 = vmatpush3.bf16.msra.mxu0 %v1058_v57  ;;  %v1117_v57 = vpop.permute.xlu0 %1116 }
 0x332   :  { %1628 = vmatprep.subr.bf16.mxu0 %v1057_v9 }
 0x335   :  { %1629 = vmatpush3.bf16.msra.mxu0 %v1057_v9  ;;  %v1107_v17 = vpop.permute.xlu0 %1106 }
 0x336   :  { %1630 = vmatprep.subr.bf16.mxu0 %v1056_v26 }
 0x339   :  { %1631 = vmatpush3.bf16.msra.mxu0 %v1056_v26  ;;  %v1102_v26 = vpop.permute.xlu1 %1101  ;;  %v1097_v49 = vpop.permute.xlu0 %1096 }
 0x33a   :  { %1632 = vmatprep.subr.bf16.mxu0 %v1055_v31 }
 0x33d   :  { %1633 = vmatpush3.bf16.msra.mxu0 %v1055_v31 }
 0x33e   :  { %1634 = vmatprep.subr.bf16.mxu0 %v1054_v32 }
 0x341   :  { %1635 = vmatpush3.bf16.msra.mxu0 %v1054_v32 }
 0x344   :  { %1637 = vmatmul.mubr.bf16.vlgmr.msra.gmra.mxu0 %v1722_v20 }
 0x345   :  { %1640 = vmatprep.mubr.bf16.mxu0 %v1723_v23  ;;  %v1092_v23 = vpop.permute.xlu1 %1091 }
 0x34c   :  { %1641 = vmatmul.mubr.bf16.gmra.mxu0 %v1724_v21 }
 0x34d   :  { %1644 = vmatprep.mubr.bf16.mxu0 %v1725_v2 }
 0x354   :  { %1645 = vmatmul.mubr.bf16.gmra.mxu0 %v1726_v16 }
 0x355   :  { %1648 = vmatprep.mubr.bf16.mxu0 %v1727_v33 }
 0x35c   :  { %1649 = vmatmul.mubr.bf16.gmra.mxu0 %v1728_v55 }
 0x404   :  { %v2292_v0 = vpop.f32.mrf.mxu0 }
 0x405   :  { %v1250_v33 = vadd.f32 %v2292_v0, %v1092_v23 }
 0x406   :  { %v2294_v10 = vpop.f32.mrf.mxu0 }
 0x408   :  { %v1639_v24 = vpop.f32.mrf.mxu0 }
 0x409   :  { %v1253_v21 = vadd.f32 %v1639_v24, %v1097_v49 }
 0x40a   :  { %v2296_v30 = vpop.f32.mrf.mxu0 }
 0x40c   :  { %v1642_v35 = vpop.f32.mrf.mxu0 }
 0x40d   :  { %v1266_v28 = vadd.f32 %v1642_v35, %v1112_v54  ;;  %v1087_v35 = vpop.permute.xlu0 %1086 }
 0x40e   :  { %v1257_v37 = vpop.f32.mrf.mxu0 }
 0x40f   :  { %v1310_v32 = vmax.f32 %v1266_v28, 0.0  ;;  %v1258_v20 = vadd.f32 %v1257_v37, %v1102_v26  ;;  %v1306_v37 = vmax.f32 %v1250_v33, 0.0 }
 0x410   :  { %v1643_v45 = vpop.f32.mrf.mxu0 }
 0x411   :  { %v1269_v18 = vadd.f32 %v1643_v45, %v1117_v57  ;;  %v1308_v55 = vmax.f32 %v1258_v20, 0.0 }
 0x412   :  { %v1260_v39 = vpop.f32.mrf.mxu0 }
 0x413   :  { %v1311_v27 = vmax.f32 %v1269_v18, 0.0  ;;  %v1261_v31 = vadd.f32 %v1260_v39, %v1107_v17  ;;  %v1082_v39 = vpop.permute.xlu1 %1081 }
 0x414   :  { %v1646_v15 = vpop.f32.mrf.mxu0 }
 0x415   :  { %v1282_v5 = vadd.f32 %v1646_v15, %v1132_v14  ;;  %v1324_v2 = vpack.c.bf16 %v1311_v27, %v1310_v32  ;;  %v1309_v16 = vmax.f32 %v1261_v31, 0.0 }
 0x416   :  { %v1273_v43 = vpop.f32.mrf.mxu0 }
 0x417   :  { %v1314_v12 = vmax.f32 %v1282_v5, 0.0  ;;  %v1274_v13 = vadd.f32 %v1273_v43, %v1122_v53  ;;  %v1323_v45 = vpack.c.bf16 %v1309_v16, %v1308_v55  ;;  %v1373_v43 = vpop.permute.xlu1 %1372 }
 0x418   :  { %v1647_v44 = vpop.f32.mrf.mxu0 }
 0x419   :  { %v1285_v4 = vadd.f32 %v1647_v44, %v1137_v46  ;;  %v1312_v29 = vmax.f32 %v1274_v13, 0.0 }
 0x41a   :  { %v1276_v11 = vpop.f32.mrf.mxu0 }
 0x41b   :  { %v1315_v58 = vmax.f32 %v1285_v4, 0.0  ;;  %v1277_v56 = vadd.f32 %v1276_v11, %v1127_v50 }
 0x41c   :  { %v1650_v19 = vpop.f32.mrf.mxu0 }
 0x41d   :  { %v1298_v48 = vadd.f32 %v1650_v19, %v1152_v38  ;;  %v1326_v3 = vpack.c.bf16 %v1315_v58, %v1314_v12  ;;  %v1313_v25 = vmax.f32 %v1277_v56, 0.0  ;;  %v1245_v38 = vadd.f32 %v2296_v30, %v1087_v35  ;;  %v1320_v30 = vld [vmem:[%s2320_s4] sm:$0xf] }
 0x41e   :  { %v1289_v47 = vpop.f32.mrf.mxu0 }
 0x41f   :  { %v1318_v60 = vmax.f32 %v1298_v48, 0.0  ;;  %v1290_v63 = vadd.f32 %v1289_v47, %v1142_v41  ;;  %v1325_v22 = vpack.c.bf16 %v1313_v25, %v1312_v29  ;;  %v1305_v15 = vmax.f32 %v1245_v38, 0.0 }
 0x420   :  { %v1651_v51 = vpop.f32.mrf.mxu0 }
 0x421   :  { %v1301_v8 = vadd.f32 %v1651_v51, %v1157_v36  ;;  %v1316_v6 = vmax.f32 %v1290_v63, 0.0  ;;  %v1307_v36 = vmax.f32 %v1253_v21, 0.0 }
 0x422   :  { %v1292_v42 = vpop.f32.mrf.mxu0 }
 0x423   :  { %v1319_v1 = vmax.f32 %v1301_v8, 0.0  ;;  %v1293_v59 = vadd.f32 %v1292_v42, %v1147_v40  ;;  %v1242_v40 = vadd.f32 %v2294_v10, %v1082_v39  ;;  %v1322_v24 = vpack.c.bf16 %v1307_v36, %v1306_v37 }
 0x424   :  { %v1378_v10 = vrot.slane %v1373_v43, %v126_v7 }
 0x425   :  { %v1328_v62 = vpack.c.bf16 %v1319_v1, %v1318_v60  ;;  %v1317_v52 = vmax.f32 %v1293_v59, 0.0  ;;  %v1304_v41 = vmax.f32 %v1242_v40, 0.0 }
 0x427   :  { %1653 = vmatpush3.bf16.msra.mxu1 %v1328_v62  ;;  %v1327_v9 = vpack.c.bf16 %v1317_v52, %v1316_v6  ;;  %v1321_v0 = vpack.c.bf16 %v1305_v15, %v1304_v41 }
 0x428   :  { %1654 = vmatprep.subr.bf16.mxu1 %v1754_v34 }
 0x42b   :  { %1655 = vmatpush3.bf16.msra.mxu1 %v1327_v9 }
 0x42c   :  { %1656 = vmatprep.subr.bf16.mxu1 %v1754_v34 }
 0x42f   :  { %1657 = vmatpush3.bf16.msra.mxu1 %v1326_v3 }
 0x430   :  { %1658 = vmatprep.subr.bf16.mxu1 %v1754_v34 }
 0x433   :  { %1659 = vmatpush3.bf16.msra.mxu1 %v1325_v22 }
 0x434   :  { %1660 = vmatprep.subr.bf16.mxu1 %v1754_v34 }
 0x437   :  { %1661 = vmatpush3.bf16.msra.mxu1 %v1324_v2 }
 0x438   :  { %1662 = vmatprep.subr.bf16.mxu1 %v1754_v34 }
 0x43b   :  { %1663 = vmatpush3.bf16.msra.mxu1 %v1323_v45 }
 0x43c   :  { %1664 = vmatprep.subr.bf16.mxu1 %v1754_v34 }
 0x43f   :  { %1665 = vmatpush3.bf16.msra.mxu1 %v1322_v24 }
 0x440   :  { %1666 = vmatprep.subr.bf16.mxu1 %v1754_v34 }
 0x443   :  { %1667 = vmatpush3.bf16.msra.mxu1 %v1321_v0 }
 0x446   :  { %1669 = vmatmul.mubr.bf16.vlgmr.msra.gmra.mxu1 %v1320_v30 }
 0x506   :  { %v1363_v44 = vpop.f32.mrf.mxu1 }
 0x507   :  { %v1379_v46 = vadd.f32 %v1378_v10, %v1363_v44 }
 0x508   :  { %v1670_v11 = vpop.f32.mrf.mxu1 }
 0x509   :  { %1380 = vst [vmem:[#allocation3] sm:$0x1] %v1379_v46 }
 0x50a   :  { %v1366_v14 = vpop.f32.mrf.mxu1 }
 0x50b   :  { %1740 = shalt.err (!%p1737_p4)
}
 0x50c   :  { %1390 = dma.vmem_to_hbm [thread:$0]  %s1388_s23, 16, %s2322_s6, [#allocation4]   ;;  %v1671_v61 = vpop.f32.mrf.mxu1 }
 0x50d   :  { %1749 = dma.done.wait [#allocation4], 16  }
 0x50e   :  { %1750 = vsyncadd [#allocation4], 4294967280 }
 0x50f   :  { %1394 = vsyncpa [#allocation4], 1 }

</bundles_post_ra>
